<compile_context>
chip_gen: v7x
topology: tpu7x:2x2x1
jax: 0.10.0
libtpu: 0.0.40
codegen_flags: <defaults>
</compile_context>

<pallas_src>
import jax
import jax.numpy as jnp
from jax.experimental import pallas as pl
from jax.experimental.pallas import tpu as pltpu

LN_EPS = 1e-5                      # torch.nn.LayerNorm default
INV_SQRT2 = 0.7071067811865476     # 1/sqrt(2), for exact (erf) GELU


def _round_up(x, m):
    return ((x + m - 1) // m) * m


def _vmem_capacity_bytes():
    """Physical VMEM per TensorCore; conservative 64 MiB (v7x) fallback."""
    try:
        info = pltpu.get_tpu_info()
        cap = getattr(info, "vmem_capacity_bytes", None)
        if cap:
            return int(cap)
    except Exception:
        pass
    return 64 << 20


def _vmem_estimate(tm, D, H, x_bytes, w_bytes):
    """Honest per-step VMEM footprint: pipelined I/O tiles, resident weights,
    and every (tm, D) / (tm, H) intermediate the kernel materializes."""
    return (2 * tm * D * x_bytes          # x row tiles (double-buffered)
            + 2 * tm * D * x_bytes        # out row tiles (double-buffered)
            + 2 * D * H * w_bytes         # resident w1 + w2 (single copy each)
            + (3 * D + H) * 4             # gamma / beta / b1 / b2 rows (f32)
            + 3 * tm * D * 4              # f32 x + LayerNorm temporaries
            + tm * D * w_bytes            # matmul-dtype copy of xn (matmul-1 LHS)
            + tm * H * 4                  # f32 hidden activations (matmul-1 out)
            + tm * H * w_bytes            # matmul-dtype GELU slab (matmul-2 LHS)
            + tm * D * 4)                 # f32 output before the final cast


def _pick_row_tile(M, D, H, x_bytes, w_bytes, vmem_cap, requested_tm):
    m8 = _round_up(max(M, 1), 8)
    # Keep >= 2 grid steps when possible so the "parallel" row axis can shard
    # across both TensorCores on 2-TC chips (v7x); 8-row minimum (sublane).
    tm_cap = max(8, _round_up(pl.cdiv(m8, 2), 8))
    budget = vmem_cap - (10 << 20)        # headroom for compiler scratch
    if requested_tm is not None:
        candidates = [int(requested_tm)]
    else:
        candidates = [512, 384, 256, 128, 64, 32, 16, 8]
    for tm in candidates:
        tm_eff = max(8, min(_round_up(tm, 8), tm_cap))
        if _vmem_estimate(tm_eff, D, H, x_bytes, w_bytes) <= budget:
            return tm_eff
    return max(8, min(64, tm_cap))


def _ffn_kernel(x_ref, g_ref, beta_ref, w1_ref, b1_ref, w2_ref, b2_ref, o_ref):
    # x_ref: (tm, D) row tile. gamma/beta/biases: (1, ·) f32 rows (broadcast).
    # w1/w2: whole-array resident VMEM operands in the matmul dtype.
    x = x_ref[...].astype(jnp.float32)

    # LayerNorm over the last dim (biased variance, eps=1e-5, matching torch).
    mean = jnp.mean(x, axis=-1, keepdims=True)
    xc = x - mean
    var = jnp.mean(xc * xc, axis=-1, keepdims=True)
    xn = xc * jax.lax.rsqrt(var + LN_EPS) * g_ref[...] + beta_ref[...]

    # Linear(dim -> hidden): narrow operands, f32 accumulation on the MXU.
    h = jnp.dot(xn.astype(w1_ref.dtype), w1_ref[...],
                preferred_element_type=jnp.float32)

    # Fused bias-add -> exact (erf) GELU -> matmul dtype: only one (tm, H)
    # slab in the matmul dtype stays live; elementwise math runs in bf16 on
    # chips with a bf16 VALU (the erf expansion promotes internally as needed).
    hb = (h + b1_ref[...]).astype(w2_ref.dtype)
    act = hb * (0.5 * (1.0 + jax.lax.erf(hb * INV_SQRT2)))

    # Linear(hidden -> dim): narrow operands, f32 accumulation.
    y = jnp.dot(act.astype(w2_ref.dtype), w2_ref[...],
                preferred_element_type=jnp.float32)
    o_ref[...] = (y + b2_ref[...]).astype(o_ref.dtype)


def feedforward_pallas(x, gamma, beta, w1, b1, w2, b2, *,
                       tm=None, matmul_dtype=jnp.bfloat16):
    """x: (B, N, D). gamma/beta: (D,), w1: (D,H), b1: (H,), w2: (H,D), b2: (D,).

    For production shapes keep D (and ideally H) multiples of 128 and pre-cast
    w1/w2 to `matmul_dtype` at parameter-load time (the per-call cast below is
    a no-op in that case). Small toy D simply uses full-dim (masked-store)
    blocks; the M-tail is zero-padded (safe: var+eps>0, rows sliced off).
    """
    B, N, D = x.shape
    H = w1.shape[1]
    M = B * N

    x_bytes = jnp.dtype(x.dtype).itemsize
    w_bytes = jnp.dtype(matmul_dtype).itemsize
    vmem_cap = _vmem_capacity_bytes()

    tm_eff = _pick_row_tile(M, D, H, x_bytes, w_bytes, vmem_cap, tm)
    grid_m = pl.cdiv(M, tm_eff)
    m_pad = grid_m * tm_eff

    x2 = x.reshape(M, D)
    if m_pad != M:
        x2 = jnp.pad(x2, ((0, m_pad - M), (0, 0)))

    # No-op when the caller already stores weights in the matmul dtype.
    w1c = w1 if w1.dtype == jnp.dtype(matmul_dtype) else w1.astype(matmul_dtype)
    w2c = w2 if w2.dtype == jnp.dtype(matmul_dtype) else w2.astype(matmul_dtype)
    gamma2 = gamma.reshape(1, D).astype(jnp.float32)
    beta2 = beta.reshape(1, D).astype(jnp.float32)
    b1_2 = b1.reshape(1, H).astype(jnp.float32)
    b2_2 = b2.reshape(1, D).astype(jnp.float32)

    est = _vmem_estimate(tm_eff, D, H, x_bytes, w_bytes)
    vmem_limit = int(min(max(est + (6 << 20), 32 << 20), vmem_cap - (2 << 20)))

    def resident():
        # Grid-invariant operand: whole-array resident in VMEM, single copy.
        return pl.BlockSpec(memory_space=pltpu.MemorySpace.VMEM)

    out = pl.pallas_call(
        _ffn_kernel,
        out_shape=jax.ShapeDtypeStruct((m_pad, D), x.dtype),
        grid_spec=pltpu.PrefetchScalarGridSpec(
            num_scalar_prefetch=0,
            grid=(grid_m,),
            in_specs=[
                pl.BlockSpec((tm_eff, D), lambda i: (i, 0)),  # x row tile
                resident(),   # gamma
                resident(),   # beta
                resident(),   # w1
                resident(),   # b1
                resident(),   # w2
                resident(),   # b2
            ],
            out_specs=pl.BlockSpec((tm_eff, D), lambda i: (i, 0)),
        ),
        compiler_params=pltpu.CompilerParams(
            dimension_semantics=("parallel",),
            vmem_limit_bytes=vmem_limit),
    )(x2, gamma2, beta2, w1c, b1_2, w2c, b2_2)

    if m_pad != M:
        out = out[:M]
    return out.reshape(B, N, D)


def feedforward_ref(x, gamma, beta, w1, b1, w2, b2, matmul_dtype=jnp.bfloat16):
    """Plain-JAX reference mirroring the PyTorch module, with the same
    narrow-operand / f32-accumulation matmuls and narrow-dtype GELU as the
    kernel (documented deviation from a pure-f32 torch run)."""
    xf = x.astype(jnp.float32)
    mean = jnp.mean(xf, axis=-1, keepdims=True)
    var = jnp.mean((xf - mean) ** 2, axis=-1, keepdims=True)
    xn = (xf - mean) * jax.lax.rsqrt(var + LN_EPS) * gamma + beta
    h = jnp.dot(xn.astype(matmul_dtype), w1.astype(matmul_dtype),
                preferred_element_type=jnp.float32)
    hb = (h + b1).astype(matmul_dtype)
    act = hb * (0.5 * (1.0 + jax.lax.erf(hb * INV_SQRT2)))
    y = jnp.dot(act.astype(matmul_dtype), w2.astype(matmul_dtype),
                preferred_element_type=jnp.float32) + b2
    return y.astype(x.dtype)


if __name__ == "__main__":
    B, N, D, Hdim = 2, 8, 32, 64  # batch, tokens, dim, hidden_dim

    key = jax.random.PRNGKey(0)
    kx, kg, kb, kw1, kb1, kw2, kb2, kx2 = jax.random.split(key, 8)

    x = jax.random.normal(kx, (B, N, D), dtype=jnp.float32)

    # Deterministic synthetic parameters (shapes from the module __init__).
    gamma = 1.0 + 0.01 * jax.random.normal(kg, (D,), dtype=jnp.float32)
    beta = 0.01 * jax.random.normal(kb, (D,), dtype=jnp.float32)
    w1 = jax.random.normal(kw1, (D, Hdim), dtype=jnp.float32) * (D ** -0.5)
    b1 = 0.01 * jax.random.normal(kb1, (Hdim,), dtype=jnp.float32)
    w2 = jax.random.normal(kw2, (Hdim, D), dtype=jnp.float32) * (Hdim ** -0.5)
    b2 = 0.01 * jax.random.normal(kb2, (D,), dtype=jnp.float32)

    # Cast weights to the matmul dtype ONCE (parameter-load time), so the
    # kernel call path does not re-read/re-write the f32 weights every step.
    w1_c = jax.block_until_ready(w1.astype(jnp.bfloat16))
    w2_c = jax.block_until_ready(w2.astype(jnp.bfloat16))

    out = jax.block_until_ready(
        feedforward_pallas(x, gamma, beta, w1_c, b1, w2_c, b2))
    ref = feedforward_ref(x, gamma, beta, w1, b1, w2, b2)
    assert out.shape == (B, N, D)
    assert jnp.allclose(out, ref, atol=1e-2, rtol=1e-2), "mismatch vs reference"

    # Second check: row count not a multiple of the tile -> exercises padding.
    x_odd = jax.random.normal(kx2, (3, 7, D), dtype=jnp.float32)
    out_odd = jax.block_until_ready(
        feedforward_pallas(x_odd, gamma, beta, w1_c, b1, w2_c, b2))
    ref_odd = feedforward_ref(x_odd, gamma, beta, w1, b1, w2, b2)
    assert out_odd.shape == (3, 7, D)
    assert jnp.allclose(out_odd, ref_odd, atol=1e-2, rtol=1e-2), "mismatch (padded)"

    print("KERNEL_OK")
</pallas_src>

<mosaic_0001>
module attributes {stable_mosaic.version = 11 : i64} {
  func.func @_ffn_kernel(%arg0: i32, %arg1: memref<8x32xf32, #tpu.memory_space<vmem>>, %arg2: memref<1x32xf32, #tpu.memory_space<vmem>>, %arg3: memref<1x32xf32, #tpu.memory_space<vmem>>, %arg4: memref<32x64xbf16, #tpu.memory_space<vmem>>, %arg5: memref<1x64xf32, #tpu.memory_space<vmem>>, %arg6: memref<64x32xbf16, #tpu.memory_space<vmem>>, %arg7: memref<1x32xf32, #tpu.memory_space<vmem>>, %arg8: memref<8x32xf32, #tpu.memory_space<vmem>>) attributes {dimension_semantics = [#tpu.dimension_semantics<parallel>], iteration_bounds = array<i64: 2>, scalar_prefetch = 0 : i64, scratch_operands = 0 : i64, tpu.core_type = #tpu.core_type<tc>, window_params = [{transform_indices = @transform_0, window_bounds = array<i64: 8, 32>}, {pipeline_mode = #tpu.pipeline_mode<synchronous>, transform_indices = @transform_1, window_bounds = array<i64: 1, 32>}, {pipeline_mode = #tpu.pipeline_mode<synchronous>, transform_indices = @transform_2, window_bounds = array<i64: 1, 32>}, {pipeline_mode = #tpu.pipeline_mode<synchronous>, transform_indices = @transform_3, window_bounds = array<i64: 32, 64>}, {pipeline_mode = #tpu.pipeline_mode<synchronous>, transform_indices = @transform_4, window_bounds = array<i64: 1, 64>}, {pipeline_mode = #tpu.pipeline_mode<synchronous>, transform_indices = @transform_5, window_bounds = array<i64: 64, 32>}, {pipeline_mode = #tpu.pipeline_mode<synchronous>, transform_indices = @transform_6, window_bounds = array<i64: 1, 32>}, {transform_indices = @transform_7, window_bounds = array<i64: 8, 32>}]} {
    %c0 = arith.constant 0 : index
    %c0_0 = arith.constant 0 : index
    %0 = vector.load %arg1[%c0, %c0_0] : memref<8x32xf32, #tpu.memory_space<vmem>>, vector<8x32xf32>
    %cst = arith.constant dense<0.000000e+00> : vector<8xf32>
    %1 = vector.multi_reduction <add>, %0, %cst [1] : vector<8x32xf32> to vector<8xf32>
    %2 = vector.shape_cast %1 : vector<8xf32> to vector<8x1xf32>
    %cst_1 = arith.constant 3.200000e+01 : f32
    %3 = vector.broadcast %cst_1 : f32 to vector<8x1xf32>
    %4 = arith.divf %2, %3 : vector<8x1xf32>
    %5 = vector.broadcast %4 : vector<8x1xf32> to vector<8x32xf32>
    %6 = arith.subf %0, %5 : vector<8x32xf32>
    %7 = arith.mulf %6, %6 : vector<8x32xf32>
    %cst_2 = arith.constant dense<0.000000e+00> : vector<8xf32>
    %8 = vector.multi_reduction <add>, %7, %cst_2 [1] : vector<8x32xf32> to vector<8xf32>
    %9 = vector.shape_cast %8 : vector<8xf32> to vector<8x1xf32>
    %cst_3 = arith.constant 3.200000e+01 : f32
    %10 = vector.broadcast %cst_3 : f32 to vector<8x1xf32>
    %11 = arith.divf %9, %10 : vector<8x1xf32>
    %cst_4 = arith.constant 9.99999974E-6 : f32
    %12 = vector.broadcast %cst_4 : f32 to vector<8x1xf32>
    %13 = arith.addf %11, %12 : vector<8x1xf32>
    %14 = math.rsqrt %13 : vector<8x1xf32>
    %15 = vector.broadcast %14 : vector<8x1xf32> to vector<8x32xf32>
    %16 = arith.mulf %6, %15 : vector<8x32xf32>
    %c0_5 = arith.constant 0 : index
    %c0_6 = arith.constant 0 : index
    %17 = vector.load %arg2[%c0_5, %c0_6] : memref<1x32xf32, #tpu.memory_space<vmem>>, vector<1x32xf32>
    %18 = vector.broadcast %17 : vector<1x32xf32> to vector<8x32xf32>
    %19 = arith.mulf %16, %18 : vector<8x32xf32>
    %c0_7 = arith.constant 0 : index
    %c0_8 = arith.constant 0 : index
    %20 = vector.load %arg3[%c0_7, %c0_8] : memref<1x32xf32, #tpu.memory_space<vmem>>, vector<1x32xf32>
    %21 = vector.broadcast %20 : vector<1x32xf32> to vector<8x32xf32>
    %22 = arith.addf %19, %21 : vector<8x32xf32>
    %23 = arith.truncf %22 : vector<8x32xf32> to vector<8x32xbf16>
    %c0_9 = arith.constant 0 : index
    %c0_10 = arith.constant 0 : index
    %24 = vector.load %arg4[%c0_9, %c0_10] : memref<32x64xbf16, #tpu.memory_space<vmem>>, vector<32x64xbf16>
    %cst_11 = arith.constant dense<0.000000e+00> : vector<8x64xf32>
    %25 = tpu.matmul %23, %24, %cst_11 {dimension_numbers = #tpu.dot_dimension_numbers<[1], [0], [0], [1], [0, 0, 1, 1], [], []>} : vector<8x32xbf16>, vector<32x64xbf16>, vector<8x64xf32> -> vector<8x64xf32>
    %c0_12 = arith.constant 0 : index
    %c0_13 = arith.constant 0 : index
    %26 = vector.load %arg5[%c0_12, %c0_13] : memref<1x64xf32, #tpu.memory_space<vmem>>, vector<1x64xf32>
    %27 = vector.broadcast %26 : vector<1x64xf32> to vector<8x64xf32>
    %28 = arith.addf %25, %27 : vector<8x64xf32>
    %29 = arith.truncf %28 : vector<8x64xf32> to vector<8x64xbf16>
    %cst_14 = arith.constant 7.070310e-01 : bf16
    %30 = vector.broadcast %cst_14 : bf16 to vector<8x64xbf16>
    %31 = arith.mulf %29, %30 : vector<8x64xbf16>
    %32 = math.erf %31 : vector<8x64xbf16>
    %cst_15 = arith.constant 1.000000e+00 : bf16
    %33 = vector.broadcast %cst_15 : bf16 to vector<8x64xbf16>
    %34 = arith.addf %33, %32 : vector<8x64xbf16>
    %cst_16 = arith.constant 5.000000e-01 : bf16
    %35 = vector.broadcast %cst_16 : bf16 to vector<8x64xbf16>
    %36 = arith.mulf %35, %34 : vector<8x64xbf16>
    %37 = arith.mulf %29, %36 : vector<8x64xbf16>
    %c0_17 = arith.constant 0 : index
    %c0_18 = arith.constant 0 : index
    %38 = vector.load %arg6[%c0_17, %c0_18] : memref<64x32xbf16, #tpu.memory_space<vmem>>, vector<64x32xbf16>
    %cst_19 = arith.constant dense<0.000000e+00> : vector<8x32xf32>
    %39 = tpu.matmul %37, %38, %cst_19 {dimension_numbers = #tpu.dot_dimension_numbers<[1], [0], [0], [1], [0, 0, 1, 1], [], []>} : vector<8x64xbf16>, vector<64x32xbf16>, vector<8x32xf32> -> vector<8x32xf32>
    %c0_20 = arith.constant 0 : index
    %c0_21 = arith.constant 0 : index
    %40 = vector.load %arg7[%c0_20, %c0_21] : memref<1x32xf32, #tpu.memory_space<vmem>>, vector<1x32xf32>
    %41 = vector.broadcast %40 : vector<1x32xf32> to vector<8x32xf32>
    %42 = arith.addf %39, %41 : vector<8x32xf32>
    %c0_22 = arith.constant 0 : index
    %c0_23 = arith.constant 0 : index
    %43 = vector.load %arg8[%c0_22, %c0_23] : memref<8x32xf32, #tpu.memory_space<vmem>>, vector<8x32xf32>
    tpu.vector_store %arg8[%c0_22, %c0_23], %42 {strides = array<i32>} : memref<8x32xf32, #tpu.memory_space<vmem>>, vector<8x32xf32>,
    return
  }
  func.func @transform_0(%arg0: i32) -> (i32, i32) {
    %c0_i32 = arith.constant 0 : i32
    %c0_i32_0 = arith.constant 0 : i32
    return %arg0, %c0_i32 : i32, i32
  }
  func.func @transform_1(%arg0: i32) -> (i32, i32) {
    %c0_i32 = arith.constant 0 : i32
    %c0_i32_0 = arith.constant 0 : i32
    %c0_i32_1 = arith.constant 0 : i32
    return %c0_i32, %c0_i32_0 : i32, i32
  }
  func.func @transform_2(%arg0: i32) -> (i32, i32) {
    %c0_i32 = arith.constant 0 : i32
    %c0_i32_0 = arith.constant 0 : i32
    %c0_i32_1 = arith.constant 0 : i32
    return %c0_i32, %c0_i32_0 : i32, i32
  }
  func.func @transform_3(%arg0: i32) -> (i32, i32) {
    %c0_i32 = arith.constant 0 : i32
    %c0_i32_0 = arith.constant 0 : i32
    %c0_i32_1 = arith.constant 0 : i32
    return %c0_i32, %c0_i32_0 : i32, i32
  }
  func.func @transform_4(%arg0: i32) -> (i32, i32) {
    %c0_i32 = arith.constant 0 : i32
    %c0_i32_0 = arith.constant 0 : i32
    %c0_i32_1 = arith.constant 0 : i32
    return %c0_i32, %c0_i32_0 : i32, i32
  }
  func.func @transform_5(%arg0: i32) -> (i32, i32) {
    %c0_i32 = arith.constant 0 : i32
    %c0_i32_0 = arith.constant 0 : i32
    %c0_i32_1 = arith.constant 0 : i32
    return %c0_i32, %c0_i32_0 : i32, i32
  }
  func.func @transform_6(%arg0: i32) -> (i32, i32) {
    %c0_i32 = arith.constant 0 : i32
    %c0_i32_0 = arith.constant 0 : i32
    %c0_i32_1 = arith.constant 0 : i32
    return %c0_i32, %c0_i32_0 : i32, i32
  }
  func.func @transform_7(%arg0: i32) -> (i32, i32) {
    %c0_i32 = arith.constant 0 : i32
    %c0_i32_0 = arith.constant 0 : i32
    return %arg0, %c0_i32 : i32, i32
  }
}

</mosaic_0001>

<bundles_post_ra>
// kernel: tpu_custom_call.1
= control target key start
LH: loop header
LB: loop body
LE: loop exit
PB: predicated region body
PF: predicated region fallthrough
CT: control target
= control target key end

     0   :  { %12 = vsyncpa [#allocation3], 0  ;;  %s882_s0 = inlined_call_operand.vmem [shape: f32[16,32], index: 0, kind: input, shape index: {}]   ;;  %s883_s1 = inlined_call_operand.vmem [shape: f32[1,32], index: 1, kind: input, shape index: {}]   ;;  %s884_s2 = inlined_call_operand.vmem [shape: f32[1,32], index: 2, kind: input, shape index: {}]   ;;  %s885_s3 = inlined_call_operand.vmem [shape: bf16[32,64], index: 3, kind: input, shape index: {}]   ;;  %s886_s4 = inlined_call_operand.vmem [shape: f32[1,64], index: 4, kind: input, shape index: {}]   ;;  %s887_s5 = inlined_call_operand.vmem [shape: bf16[64,32], index: 5, kind: input, shape index: {}]   ;;  %s888_s6 = inlined_call_operand.vmem [shape: f32[1,32], index: 6, kind: input, shape index: {}]   ;;  %s889_s7 = inlined_call_operand.hbm [shape: f32[16,32], index: 7, kind: output, shape index: {}]  }
   0x1   :  { %14 = vsyncpa [#allocation3 + $0x1], 0  ;;  %s748_s24 = smov 0   ;;  %s750_s25 = smov 0  }
   0x2   :  { %s752_s26 = smov 0   ;;  %s754_s27 = smov 0  }
   0x3 LB: > { %s769_s28 = sadd.s32 4294967295, %s703_s27   ;;  %s540_s29 = sadd.s32 4294967294, %s703_s27   ;;  %s703_s27 = sphi %s754_s27, %s895_s27   ;;  %s699_s26 = sphi %s752_s26, %s894_s26   ;;  %s695_s25 = sphi %s750_s25, %s893_s25   ;;  %s691_s24 = sphi %s748_s24, %s892_s24  }
   0x4   : > { %s773_s30 = sadd.s32 1, %s703_s27   ;;  %s179_s8 = sadd.s32 1, %s699_s26 }
   0x5   : > { %s176_s9 = ssub.s32 %s703_s27, %s773_s30  ;;  %p189_p0 = scmp.ne.s32.totalorder %s699_s26, %s695_s25 }
   0x6   : > { %p177_p1 = scmp.eq.s32.totalorder %s176_s9, 0  ;;  %p190_p2 = scmp.eq.s32.totalorder %s769_s28, 1 }
   0x7   : > { %p195_p3 = scmp.ne.s32.totalorder %s695_s25, %s691_s24  ;;  %p196_p4 = scmp.eq.s32.totalorder %s540_s29, 1 }
   0x8   : > { %s784_s10 = scalar_select %p177_p1, %s699_s26, %s179_s8  }
   0x9   : > { %p786_p5 = por %p190_p2, %p189_p0  ;;  %p790_p6 = por %p196_p4, %p195_p3 }
   0xa   : > { %p543_p7 = scmp.ge.s32.totalorder %s703_s27, 1  ;;  %p239_p8 = scmp.lt.s32.totalorder %s703_s27, 3 }
   0xc   : > { %p240_p9 = pnand %p543_p7, %p239_p8 }
   0xd   : > { %p270_p10 = scmp.lt.s32.totalorder (!%p240_p9), %s769_s28, 1  ;;  %vm279_vm0 = vcmask (!%p240_p9), 261120   ;;  %v631_v7 = vld [vmem:[%s885_s3] sm:$0xff] (!%p240_p9)   ;;  %v705_v8 = vmov (!%p240_p9), 0.0   ;;  %v632_v9 = vld [vmem:[%s885_s3 + $0x8] sm:$0xff] (!%p240_p9)   ;;  %vm706_vm1 = vmmov (!%p240_p9), 0  }
   0xe   : > { %243 = sbr.rel (%p240_p9) target bundleno = 805 (0x325), region = 48  ;;  %570 = vmatprep.subr.bf16.mxu0 (!%p240_p9), %v705_v8  ;;  %578 = vmatprep.subr.bf16.mxu1 (!%p240_p9), %v705_v8  ;;  %v546_v14 = vld [vmem:[%s883_s1] ss:$0 sm:$0xff] (!%p240_p9)  ;;  %v634_v21 = vld [vmem:[%s887_s5 + $0x8] sm:$0xff] (!%p240_p9)   ;;  %v635_v22 = vld [vmem:[%s887_s5 + $0x10] sm:$0xff] (!%p240_p9)   ;;  %vm422_vm2 = vcmask (!%p240_p9), 523264  }
   0xf   : > { %571 = vmatpush3.bf16.msra.mxu0 (!%p240_p9), %v631_v7  ;;  %574 = vmatprep.mubr.msk.bf16.mxu0 (!%p240_p9), %vm706_vm1, %v705_v8  ;;  %v547_v16 = vld [vmem:[%s884_s2] ss:$0 sm:$0xff] (!%p240_p9)  ;;  %v636_v23 = vld [vmem:[%s887_s5 + $0x18] sm:$0xff] (!%p240_p9)   ;;  %s267_s22 = sand.u32 (!%p240_p9), 1, %s695_s25   ;;  %s559_s9 = sshll.u32 (!%p240_p9), %s769_s28, 7 }
  0x10   : > { %572 = vmatprep.subr.bf16.mxu0 (!%p240_p9), %v705_v8  ;;  %586 = vmatprep.mubr.msk.bf16.mxu1 (!%p240_p9), %vm706_vm1, %v705_v8  ;;  %v633_v20 = vld [vmem:[%s887_s5] sm:$0xff] (!%p240_p9)   ;;  %s544_s23 = sshll.u32 (!%p240_p9), %s267_s22, 3  ;;  %s707_s19 = smov (!%p240_p9), [#allocation2]  }
  0x11   : > { %579 = vmatpush3.bf16.msra.mxu1 (!%p240_p9), %v633_v20  ;;  %v548_v24 = vld [vmem:[%s886_s4] ss:$0 sm:$0xff] (!%p240_p9)  ;;  %s645_s20 = sshll.u32 (!%p240_p9), %s707_s19, 4  ;;  %s646_s20 = int_to_ptr.vmem [resolvable:$false] %s645_s20 }
  0x12   : > { %580 = vmatprep.subr.bf16.mxu1 (!%p240_p9), %v705_v8  ;;  %v552_v36 = vld [vmem:[%s888_s6] ss:$0 sm:$0xff] (!%p240_p9)  ;;  %s647_s21 = scalar_lea.vmem (!%p240_p9), %s646_s20, 256 }
  0x13   : > { %573 = vmatpush3.bf16.msra.mxu0 (!%p240_p9), %v632_v9 }
  0x15   : > { %s271_s13 = scalar_select %p270_p10, %s769_s28, 1  ;;  %581 = vmatpush3.bf16.msra.mxu1 %v634_v21 }
  0x16   : > { %582 = vmatprep.subr.bf16.mxu1 %v705_v8  ;;  %s468_s28 = scalar_lea.sflag [#allocation3], %s267_s22 }
  0x17   : > { %s545_s14 = sshll.u32 %s271_s13, 3  ;;  %s269_s13 = scalar_lea.vmem [#allocation2], %s544_s23 }
  0x18   : > { %s273_s17 = scalar_lea.vmem %s882_s0, %s545_s14  ;;  %s481_s14 = sshll.u32 %s269_s13, 4  ;;  %s841_s14 = int_to_ptr.vmem [resolvable:$true] %s481_s14 }
  0x19   : > { %v278_v0 = vld [vmem:[%s273_s17] sm:$0xff]  ;;  %583 = vmatpush3.bf16.msra.mxu1 %v635_v22  ;;  %s839_s17 = scalar_lea.hbm %s889_s7, %s559_s9  ;;  %s641_s18 = scalar_lea.vmem %s841_s14, 128 }
  0x1a   : > { %v280_v1 = vsel %vm279_vm0, %v278_v0, 0.0  ;;  %584 = vmatprep.subr.bf16.mxu1 %v705_v8  ;;  %p642_p11 = scmp.ne.s32.totalorder %s841_s14, %s641_s18  ;;  %p648_p0 = scmp.lt.s32.totalorder %s841_s14, %s646_s20 }
  0x1b   : > { %281 = vadd.xlane.f32.xlu0 %v280_v1  ;;  %p649_p1 = scmp.lt.s32.totalorder %s647_s21, %s641_s18 }
  0x1c   : > { %p643_p12 = pnand %p642_p11, %p786_p5 }
  0x1d   : > { %585 = vmatpush3.bf16.msra.mxu1 %v636_v23  ;;  %p650_p2 = por %p649_p1, %p648_p0 }
  0x1e   : > { %p644_p13 = pneg %p643_p12 }
  0x20   : > { %p651_p3 = pnand %p650_p2, %p644_p13 }
  0xa8   : > { %v282_v2 = vpop.xlane.xlu0 %281 }
  0xa9   : > { %v284_v3 = vmul.f32 0.03125, %v282_v2 }
  0xab   : > { %v285_v4 = vsub.f32 %v278_v0, %v284_v3 }
  0xad   : > { %v286_v5 = vmul.f32 %v285_v4, %v285_v4 }
  0xaf   : > { %v287_v6 = vsel %vm279_vm0, %v286_v5, 0.0 }
  0xb0   : > { %288 = vadd.xlane.f32.xlu0 %v287_v6 }
 0x13d   : > { %v289_v10 = vpop.xlane.xlu0 %288 }
 0x13e   : > { %v290_v11 = vmul.f32 0.03125, %v289_v10 }
 0x140   : > { %v291_v12 = vadd.f32 1e-05, %v290_v11 }
 0x142   : > { %637 = vrsqrt.f32 %v291_v12 }
 0x14c   : > { %v638_v13 = vpop.eup %637 }
 0x14d   : > { %v293_v15 = vmul.f32 %v638_v13, %v285_v4 }
 0x14f   : > { %v301_v17 = vmul.f32 %v546_v14, %v293_v15 }
 0x151   : > { %v309_v18 = vadd.f32 %v547_v16, %v301_v17 }
 0x153   : > { %v310_v19 = vpack.c.bf16 %v309_v18, %v309_v18 }
 0x155   : > { %575 = vmatmul.mubr.msk.bf16.vlgmr.msra.gmra.mrb[0].mxu0 %vm279_vm0, %v310_v19 }
 0x228   : > { %v371_v25 = vpop.f32.mrb[0].mxu0 }
 0x229   : > { %v372_v26 = vadd.f32 %v548_v24, %v371_v25  ;;  %v576_v27 = vpop.f32.mrb[1].mxu0 }
 0x22a   : > { %v374_v28 = vpop.f32.mrb[2].mxu0 }
 0x22b   : > { %v377_v29 = vpack.c.bf16 %v372_v26, %v372_v26  ;;  %v577_v30 = vpop.f32.mrb[3].mxu0 }
 0x22d   : > { %v378_v31 = vmul.bf16 1060454197, %v377_v29 }
 0x22f   : > { %639 = verf.bf16 %v378_v31 }
 0x23a   : > { %v640_v32 = vpop.eup %639 }
 0x23b   : > { %v380_v33 = vadd.bf16 1065369472, %v640_v32 }
 0x23d   : > { %v381_v34 = vmul.bf16 1056980736, %v380_v33 }
 0x23f   : > { %v382_v35 = vmul.bf16 %v381_v34, %v377_v29 }
 0x241   : > { %587 = vmatmul.mubr.msk.bf16.vlgmr.msra.gmra.mrb[0].mxu1 %vm422_vm2, %v382_v35 }
 0x314   : > { %v460_v37 = vpop.f32.mrb[0].mxu1 }
 0x315   : > { %v461_v38 = vadd.f32 %v552_v36, %v460_v37  ;;  %v588_v39 = vpop.f32.mrb[1].mxu1 }
 0x316   : > { %v463_v40 = vpop.f32.mrb[2].mxu1 }
 0x317   : > { %v589_v41 = vpop.f32.mrb[3].mxu1  ;;  %466 = vst.msk [vmem:[%s269_s13] sm:$0xff] %vm279_vm0, %v461_v38 }
 0x318   : > { %654 = shalt.err (!%p651_p3)
}
 0x319   : > { %s655_s22 = scalar_lea.hbm %s839_s17, 128  ;;  %s659_s8 = scalar_lea.hbm %s889_s7, 256 }
 0x31a   : > { %p656_p4 = scmp.ne.s32.totalorder %s839_s17, %s655_s22  ;;  %p660_p9 = scmp.lt.u32.totalorder %s839_s17, %s889_s7 }
 0x31b   : > { %p661_p10 = scmp.lt.u32.totalorder %s659_s8, %s655_s22  ;;  %p663_p12 = scmp.lt.u32.totalorder %s655_s22, %s839_s17 }
 0x31c   : > { %p657_p7 = pnand %p656_p4, %p786_p5 }
 0x31d   : > { %p662_p11 = por %p661_p10, %p660_p9 }
 0x31e   : > { %p658_p8 = pneg %p657_p7 }
 0x31f   : > { %p664_p13 = por %p663_p12, %p662_p11 }
 0x321   : > { %p665_p0 = pnand %p664_p13, %p658_p8 }
 0x323   : > { %668 = shalt.err (!%p665_p0)
}
 0x324   : > { %590 = dma.vmem_to_hbm [thread:$0]  (%p786_p5), %s841_s14, 128, %s839_s17, %s468_s28  }
 0x325 PF: > { %p596_p1 = scmp.ge.s32.totalorder %s703_s27, 2  ;;  %s493_s15 = sand.u32 1, %s691_s24  }
 0x326   : > { %s494_s16 = scalar_lea.sflag [#allocation3], %s493_s15 }
 0x327   : > { %p593_p2 = pnand %p596_p1, %p790_p6 }
 0x329   : > { %686 = dma.done.wait (!%p593_p2), %s494_s16, 128  }
 0x32a   : > { %688 = vsyncadd (!%p593_p2), %s494_s16, 4294967168  ;;  %p17_p3 = scmp.ge.s32.totalorder %s773_s30, 4   ;;  %s892_s24 = smov %s695_s25 }
 0x32b   : > { %s893_s25 = smov %s699_s26  ;;  %s894_s26 = smov %s784_s10 }
 0x32c   : > { %s895_s27 = smov %s773_s30  ;;  %19 = sbr.rel (!%p17_p3) target bundleno = 3 (0x3), region = 83 }
 0x333   :  { %499 = vsyncpa [#allocation3], 1 }
 0x334   :  { %501 = vsyncpa [#allocation3 + $0x1], 1 }

</bundles_post_ra>
